<compile_context>
chip_gen: v5e
topology: v5e:2x2
jax: 0.10.0
libtpu: 0.0.40
codegen_flags: <defaults>
</compile_context>

<pallas_src>
import jax
import jax.numpy as jnp
from jax.experimental import pallas as pl
from jax.experimental.pallas import tpu as pltpu


def _round_up(x, m):
    return ((x + m - 1) // m) * m


def _round_down(x, m):
    return max(m, (x // m) * m)


def _sublane(dtype):
    # Sub-32-bit dtypes pack along sublanes: 8 rows for 4B, 16 for 2B, 32 for 1B.
    return {4: 8, 2: 16, 1: 32}.get(jnp.dtype(dtype).itemsize, 8)


# Default VMEM budget for tile sizing: comfortably inside v7x's 64 MiB physical
# VMEM (and trivially inside v5e/v6e's 128 MiB), with headroom for the
# compiler's own scratch.
_VMEM_BUDGET = 40 * 1024 * 1024


def _linear_resident_kernel(x_ref, w_ref, b_ref, o_ref):
    # Fast path (grid_K == 1): whole contraction resident -> one MXU pass per
    # (M, N) tile, bias added on the f32 result, single store. No scratch.
    acc = jnp.dot(x_ref[...], w_ref[...], preferred_element_type=jnp.float32)
    o_ref[...] = (acc + b_ref[...].astype(jnp.float32)).astype(o_ref.dtype)


def _linear_kacc_kernel(x_ref, w_ref, b_ref, o_ref, acc_ref):
    # Fallback for very large F_in: accumulate over K tiles in f32 VMEM scratch.
    k = pl.program_id(2)

    @pl.when(k == 0)
    def _():
        acc_ref[...] = jnp.zeros_like(acc_ref)

    acc_ref[...] += jnp.dot(x_ref[...], w_ref[...],
                            preferred_element_type=jnp.float32)

    @pl.when(k == pl.num_programs(2) - 1)
    def _():
        o_ref[...] = (acc_ref[...] + b_ref[...].astype(jnp.float32)
                      ).astype(o_ref.dtype)


def linear_pallas(x2d, w, b, *, compute_dtype=None, tm=512, tn=512, tk=512,
                  vmem_budget=_VMEM_BUDGET):
    """y = x2d @ w + b with a resident-weight, M-tiled Pallas kernel.

    x2d: (M, K), w: (K, N), b: (N,). Returns (M, N) in x2d's dtype.
    K is accumulated over grid tiles only when the weight strip cannot stay
    resident in VMEM; N is tiled only for very large F_out.
    """
    M, K = x2d.shape
    K2, N = w.shape
    assert K == K2 and b.shape == (N,)
    out_dtype = x2d.dtype

    if compute_dtype is not None:          # optional bf16 operands, f32 accum
        x2d = x2d.astype(compute_dtype)
        w = w.astype(compute_dtype)
    xsz = jnp.dtype(x2d.dtype).itemsize
    wsz = jnp.dtype(w.dtype).itemsize
    osz = jnp.dtype(out_dtype).itemsize
    sub = _sublane(x2d.dtype)

    # ---- tile selection (VMEM-budgeted) ----------------------------------
    # N: full output width per block unless the weight strip would dominate
    #    VMEM; a tiled TN is a multiple of 128 (ragged N tail is clipped by
    #    the output BlockSpec, so no padding needed).
    if N <= 512 or 2 * K * N * wsz <= vmem_budget // 2:
        TN = N
    else:
        TN = min(_round_up(tn, 128), _round_up(N, 128))
        if TN >= N:
            TN = N

    # K: keep the full contraction resident (weight DMA'd once, no scratch
    #    accumulator) whenever the (K, TN) weight strip + an x row-strip fit.
    k_tiled = (2 * K * TN * wsz + 2 * sub * K * xsz) > (2 * vmem_budget) // 3
    TK = min(_round_up(tk, 128), _round_up(K, 128)) if k_tiled else K

    # Padding: only on K, only when K is tiled (a ragged K tile would feed
    # undefined data into the contraction). M and N are never padded.
    Kp = K
    if k_tiled and K % TK != 0:
        x2d = jnp.pad(x2d, ((0, 0), (0, Kp := _round_up(K, TK)) and (0, Kp - K)))
        w = jnp.pad(w, ((0, Kp - K), (0, 0)))
    b2d = b.reshape(1, N)

    # M: the largest tile the remaining budget allows, capped so the M grid
    # has >= 2 tiles (both v7x TensorCores get work) and rounded to the
    # dtype's sublane multiple.
    fixed = 2 * TK * TN * wsz + 2 * TN * 4
    per_row = 2 * TK * xsz + 2 * TN * osz + (TN * 4 if k_tiled else 0)
    tm_cap = max(sub, (vmem_budget - fixed) // per_row)
    TM = min(tm, tm_cap)
    if M > 2 * sub:
        TM = min(TM, _round_up(pl.cdiv(M, 2), sub))
    TM = M if TM >= M else _round_down(TM, sub)

    grid = (pl.cdiv(N, TN), pl.cdiv(M, TM), pl.cdiv(Kp, TK))

    kernel = _linear_kacc_kernel if k_tiled else _linear_resident_kernel
    scratch = [pltpu.VMEM((TM, TN), jnp.float32)] if k_tiled else []

    # Explicit VMEM budget for the compiler (scoped defaults are 16/32/32 MiB
    # on v5e/v6e/v7x); stay below v7x's 64 MiB physical VMEM.
    est = (2 * TM * TK * xsz + 2 * TK * TN * wsz + 2 * TN * 4
           + 2 * TM * TN * osz + (TM * TN * 4 if k_tiled else 0))
    vmem_limit = int(min(max(est * 13 // 10, 12 << 20), 60 << 20))

    return pl.pallas_call(
        kernel,
        out_shape=jax.ShapeDtypeStruct((M, N), out_dtype),
        grid_spec=pltpu.PrefetchScalarGridSpec(
            num_scalar_prefetch=0,
            grid=grid,
            in_specs=[
                pl.BlockSpec((TM, TK), lambda j, i, k: (i, k)),   # x (streamed)
                pl.BlockSpec((TK, TN), lambda j, i, k: (k, j)),   # w (resident)
                pl.BlockSpec((1, TN), lambda j, i, k: (0, j)),    # bias
            ],
            out_specs=pl.BlockSpec((TM, TN), lambda j, i, k: (i, j)),
            scratch_shapes=scratch,
        ),
        compiler_params=pltpu.CompilerParams(
            # N and M tiles are independent -> megacore-shardable; K (when
            # tiled) carries the accumulator -> arbitrary, last grid axis.
            dimension_semantics=("parallel", "parallel", "arbitrary"),
            vmem_limit_bytes=vmem_limit,
        ),
    )(x2d, w, b2d)


# Below this many output MACs, pallas_call launch overhead dominates -> use XLA.
_PALLAS_MIN_WORK = 1 << 16


def time_distributed_forward(x, w, b, batch_first=False, use_pallas=None,
                             **kwargs):
    """Pallas implementation of TimeDistributed(Linear).forward.

    x: rank-2 (N, F_in) passes straight through the wrapped Linear;
       rank-3 (T, B, F_in) [batch_first=False] / (B, T, F_in) [batch_first=True].
    w: (F_in, F_out)  (transpose of PyTorch's Linear.weight), b: (F_out,).
    """
    def _apply(x2d):
        if use_pallas is False:
            return x2d @ w + b
        tiny = x2d.shape[0] * x2d.shape[1] * w.shape[1] < _PALLAS_MIN_WORK
        if use_pallas is None and tiny:
            return x2d @ w + b
        return linear_pallas(x2d, w, b, **kwargs)

    if x.ndim <= 2:
        return _apply(x)
    # x.contiguous().view(-1, x.size(-1))
    x2d = x.reshape(-1, x.shape[-1])
    y2d = _apply(x2d)
    if batch_first:
        # y.view(x.size(0), -1, y.size(-1))
        return y2d.reshape(x.shape[0], -1, y2d.shape[-1])
    # y.view(-1, x.size(1), y.size(-1))
    return y2d.reshape(-1, x.shape[1], y2d.shape[-1])


if __name__ == "__main__":
    key = jax.random.PRNGKey(0)
    kx, kw, kb, kx2, kw2 = jax.random.split(key, 5)

    # ---- Test 1: resident-weight fast path (no K axis, zero padding) -----
    # T*B = 128 rows, F_in = 200 (full-extent K block), F_out = 96.
    # tm=48 -> 3 M tiles with a ragged last tile (clipped by the out BlockSpec).
    T, B, F_in, F_out = 8, 16, 200, 96
    x = jax.random.normal(kx, (T, B, F_in), dtype=jnp.float32)
    w = jax.random.normal(kw, (F_in, F_out), dtype=jnp.float32) * 0.05
    b = jax.random.normal(kb, (F_out,), dtype=jnp.float32) * 0.05

    y = time_distributed_forward(x, w, b, batch_first=False,
                                 use_pallas=True, tm=48)
    y = jax.block_until_ready(y)
    y_ref = (x.reshape(-1, F_in) @ w + b).reshape(-1, B, F_out)
    assert y.shape == (T, B, F_out)
    assert jnp.allclose(y, y_ref, atol=1e-3, rtol=1e-3)

    # batch_first=True path (same kernel, different un-flatten).
    yb = time_distributed_forward(x, w, b, batch_first=True,
                                  use_pallas=True, tm=48)
    yb = jax.block_until_ready(yb)
    yb_ref = (x.reshape(-1, F_in) @ w + b).reshape(T, -1, F_out)
    assert jnp.allclose(yb, yb_ref, atol=1e-3, rtol=1e-3)

    # rank-2 input passes straight through the wrapped module.
    x2 = x[0]  # (B, F_in)
    y2 = jax.block_until_ready(
        time_distributed_forward(x2, w, b, use_pallas=True, tm=48))
    assert jnp.allclose(y2, x2 @ w + b, atol=1e-3, rtol=1e-3)

    # ---- Test 2: K-accumulated fallback (forced via a tiny VMEM budget) ---
    F_in2 = 512
    xk = jax.random.normal(kx2, (T, B, F_in2), dtype=jnp.float32)
    wk = jax.random.normal(kw2, (F_in2, F_out), dtype=jnp.float32) * 0.05
    yk = time_distributed_forward(xk, wk, b, use_pallas=True,
                                  tm=48, tk=128, vmem_budget=200 * 1024)
    yk = jax.block_until_ready(yk)
    yk_ref = (xk.reshape(-1, F_in2) @ wk + b).reshape(-1, B, F_out)
    assert jnp.allclose(yk, yk_ref, atol=1e-3, rtol=1e-3)

    # ---- Test 3: opt-in bf16 operands with f32 accumulation ---------------
    ybf = time_distributed_forward(x, w, b, use_pallas=True, tm=48,
                                   compute_dtype=jnp.bfloat16)
    ybf = jax.block_until_ready(ybf)
    assert ybf.dtype == x.dtype
    assert jnp.allclose(ybf, y_ref, atol=5e-2, rtol=5e-2)

    print("KERNEL_OK")
</pallas_src>

<mosaic_0001>
module attributes {stable_mosaic.version = 11 : i64} {
  func.func @_linear_resident_kernel(%arg0: i32, %arg1: i32, %arg2: i32, %arg3: memref<48x200xf32, #tpu.memory_space<vmem>>, %arg4: memref<200x96xf32, #tpu.memory_space<vmem>>, %arg5: memref<1x96xf32, #tpu.memory_space<vmem>>, %arg6: memref<48x96xf32, #tpu.memory_space<vmem>>) attributes {dimension_semantics = [#tpu.dimension_semantics<parallel>, #tpu.dimension_semantics<parallel>, #tpu.dimension_semantics<arbitrary>], iteration_bounds = array<i64: 1, 3, 1>, scalar_prefetch = 0 : i64, scratch_operands = 0 : i64, tpu.core_type = #tpu.core_type<tc>, window_params = [{transform_indices = @transform_0, window_bounds = array<i64: 48, 200>}, {transform_indices = @transform_1, window_bounds = array<i64: 200, 96>}, {transform_indices = @transform_2, window_bounds = array<i64: 1, 96>}, {transform_indices = @transform_3, window_bounds = array<i64: 48, 96>}]} {
    %c0 = arith.constant 0 : index
    %c0_0 = arith.constant 0 : index
    %0 = vector.load %arg3[%c0, %c0_0] : memref<48x200xf32, #tpu.memory_space<vmem>>, vector<48x200xf32>
    %c0_1 = arith.constant 0 : index
    %c0_2 = arith.constant 0 : index
    %1 = vector.load %arg4[%c0_1, %c0_2] : memref<200x96xf32, #tpu.memory_space<vmem>>, vector<200x96xf32>
    %cst = arith.constant dense<0.000000e+00> : vector<48x96xf32>
    %2 = tpu.matmul %0, %1, %cst {dimension_numbers = #tpu.dot_dimension_numbers<[1], [0], [0], [1], [0, 0, 1, 1], [], []>} : vector<48x200xf32>, vector<200x96xf32>, vector<48x96xf32> -> vector<48x96xf32>
    %c0_3 = arith.constant 0 : index
    %c0_4 = arith.constant 0 : index
    %3 = vector.load %arg5[%c0_3, %c0_4] : memref<1x96xf32, #tpu.memory_space<vmem>>, vector<1x96xf32>
    %4 = vector.broadcast %3 : vector<1x96xf32> to vector<48x96xf32>
    %5 = arith.addf %2, %4 : vector<48x96xf32>
    %c0_5 = arith.constant 0 : index
    %c0_6 = arith.constant 0 : index
    %6 = vector.load %arg6[%c0_5, %c0_6] : memref<48x96xf32, #tpu.memory_space<vmem>>, vector<48x96xf32>
    tpu.vector_store %arg6[%c0_5, %c0_6], %5 {strides = array<i32>} : memref<48x96xf32, #tpu.memory_space<vmem>>, vector<48x96xf32>,
    return
  }
  func.func @transform_0(%arg0: i32, %arg1: i32, %arg2: i32) -> (i32, i32) {
    %c0_i32 = arith.constant 0 : i32
    return %arg1, %arg2 : i32, i32
  }
  func.func @transform_1(%arg0: i32, %arg1: i32, %arg2: i32) -> (i32, i32) {
    %c0_i32 = arith.constant 0 : i32
    return %arg2, %arg0 : i32, i32
  }
  func.func @transform_2(%arg0: i32, %arg1: i32, %arg2: i32) -> (i32, i32) {
    %c0_i32 = arith.constant 0 : i32
    %c0_i32_0 = arith.constant 0 : i32
    return %c0_i32, %arg0 : i32, i32
  }
  func.func @transform_3(%arg0: i32, %arg1: i32, %arg2: i32) -> (i32, i32) {
    %c0_i32 = arith.constant 0 : i32
    return %arg1, %arg0 : i32, i32
  }
}

</mosaic_0001>

<bundles_post_ra>
// kernel: tpu_custom_call.1
= control target key start
LH: loop header
LB: loop body
LE: loop exit
PB: predicated region body
PF: predicated region fallthrough
CT: control target
= control target key end

     0   :  { %s1000_s12 = smov 0   ;;  %s1002_s13 = smov 0   ;;  %s1229_s0 = inlined_call_operand.vmem [shape: f32[128,200], index: 0, kind: input, shape index: {}]   ;;  %s1230_s1 = inlined_call_operand.vmem [shape: f32[200,96], index: 1, kind: input, shape index: {}]   ;;  %s1231_s2 = inlined_call_operand.vmem [shape: f32[1,96], index: 2, kind: input, shape index: {}]   ;;  %s1232_s3 = inlined_call_operand.vmem [shape: f32[128,96], index: 3, kind: output, shape index: {}]  }
   0x1   :  { %s1004_s14 = smov 0   ;;  %s1006_s15 = smov 0  }
   0x2   :  { %s1008_s16 = smov 0  }
   0x3 LB: > { %s709_s17 = sadd.s32 4294967295, %s946_s16   ;;  %s28_s18 = sadd.s32 1, %s942_s15  ;;  %s946_s16 = sphi %s1008_s16, %s13_s16   ;;  %s942_s15 = sphi %s1006_s15, %s1240_s15   ;;  %s938_s14 = sphi %s1004_s14, %s1239_s14   ;;  %s934_s13 = sphi %s1002_s13, %s1238_s13   ;;  %s930_s12 = sphi %s1000_s12, %s1237_s12  }
   0x4   : > { %p30_p0 = scmp.ge.s32.totalorder %s28_s18, 3  ;;  %s123_s19 = sadd.s32 1, %s934_s13 }
   0x5   : > { %p133_p1 = scmp.ne.s32.totalorder %s934_s13, %s930_s12  ;;  %p134_p2 = scmp.eq.s32.totalorder %s709_s17, 2 }
   0x6   : > { %s1242_s18 = smov (%p30_p0, %s28_s18), 0  ;;  %p715_p4 = scmp.ge.s32.totalorder %s946_s16, 1 }
   0x7   : > { %p1032_p3 = por %p134_p2, %p133_p1  ;;  %s118_s21 = ssub.s32 %s942_s15, %s1242_s18 }
   0x8   : > { %p201_p5 = scmp.lt.s32.totalorder %s946_s16, 4  ;;  %p121_p6 = scmp.eq.s32.totalorder %s118_s21, 0 }
   0xa   : > { %p202_p7 = pnand %p715_p4, %p201_p5 }
   0xb   : > { %s1041_s22 = scalar_select %p121_p6, %s934_s13, %s123_s19  }
   0xc   : > { %205 = sbr.rel (%p202_p7) target bundleno = 264 (0x108), region = 32  ;;  %s242_s25 = sand.u32 (!%p202_p7), 1, %s930_s12  }
   0xd   : > { %s1050_s27 = smul.u32 (!%p202_p7), 6, %s938_s14 }
   0xe   : > { %s763_s29 = smul.u32 (!%p202_p7), 48, %s242_s25 }
   0xf   : > { %p252_p8 = scmp.lt.s32.totalorder (!%p202_p7), %s1050_s27, 15 }
  0x10   : > { %s1150_s30 = scalar_lea.vmem (!%p202_p7), [#allocation2], %s763_s29  }
  0x11   : > { %v311_v0 = vld [vmem:[%s1230_s1 + $0x78] sm:$0xff]  ;;  %v310_v1 = vld [vmem:[%s1230_s1 + $0x70] sm:$0xff]  ;;  %v320_v2 = vld [vmem:[%s1230_s1 + $0xc0] sm:$0xff]  ;;  %s253_s23 = scalar_select %p252_p8, %s1050_s27, 15  ;;  %vm325_vm0 = vcmask 588800   ;;  %vm414_vm1 = vcmask 785408  }
  0x12   : > { %738 = vmatpush.msra.mxu2 %v311_v0  ;;  %344 = vmatpush.msra.mxu0 %v311_v0  ;;  %v309_v3 = vld [vmem:[%s1230_s1 + $0x68] sm:$0xff]  ;;  %v319_v4 = vld [vmem:[%s1230_s1 + $0xb8] sm:$0xff]  ;;  %v318_v5 = vld [vmem:[%s1230_s1 + $0xb0] sm:$0xff]  ;;  %s429_s12 = ssub.s32 (%p1032_p3), 16, %s1050_s27 }
  0x13   : > { %386 = vmatpush.msra.mxu1 %v320_v2  ;;  %754 = vmatpush.msra.mxu3 %v320_v2  ;;  %v308_v6 = vld [vmem:[%s1230_s1 + $0x60] sm:$0xff]  ;;  %v317_v7 = vld [vmem:[%s1230_s1 + $0xa8] sm:$0xff]  ;;  %v307_v8 = vld [vmem:[%s1230_s1 + $0x58] sm:$0xff]  ;;  %s736_s6 = sshll.u32 %s253_s23, 4  ;;  %p430_p9 = scmp.lt.s32.totalorder (%p1032_p3), %s429_s12, 6 }
  0x14   : > { %739 = vmatpush.msra.mxu2 %v310_v1  ;;  %345 = vmatpush.msra.mxu0 %v310_v1  ;;  %v316_v9 = vld [vmem:[%s1230_s1 + $0xa0] sm:$0xff]  ;;  %v306_v10 = vld [vmem:[%s1230_s1 + $0x50] sm:$0xff]  ;;  %v315_v11 = vld [vmem:[%s1230_s1 + $0x98] sm:$0xff]  ;;  %s1099_s23 = scalar_lea.vmem %s1229_s0, %s736_s6 }
  0x15   : > { %387 = vmatpush.msra.mxu1 %v319_v4  ;;  %755 = vmatpush.msra.mxu3 %v319_v4  ;;  %v305_v12 = vld [vmem:[%s1230_s1 + $0x48] sm:$0xff]  ;;  %v314_v13 = vld [vmem:[%s1230_s1 + $0x90] sm:$0xff]  ;;  %v304_v14 = vld [vmem:[%s1230_s1 + $0x40] sm:$0xff] }
  0x16   : > { %740 = vmatpush.msra.mxu2 %v309_v3  ;;  %346 = vmatpush.msra.mxu0 %v309_v3  ;;  %v313_v15 = vld [vmem:[%s1230_s1 + $0x88] sm:$0xff]  ;;  %v303_v16 = vld [vmem:[%s1230_s1 + $0x38] sm:$0xff]  ;;  %v312_v17 = vld [vmem:[%s1230_s1 + $0x80] sm:$0xff] }
  0x17   : > { %388 = vmatpush.msra.mxu1 %v318_v5  ;;  %756 = vmatpush.msra.mxu3 %v318_v5  ;;  %v302_v18 = vld [vmem:[%s1230_s1 + $0x30] sm:$0xff]  ;;  %v285_v19 = vld [vmem:[%s1099_s23 + $0x8] sm:$0xff]  ;;  %v300_v22 = vld [vmem:[%s1230_s1 + $0x20] sm:$0xff] }
  0x18   : > { %741 = vmatpush.msra.mxu2 %v308_v6  ;;  %347 = vmatpush.msra.mxu0 %v308_v6  ;;  %v293_v20 = vld [vmem:[%s1099_s23 + $0x48] sm:$0xff]  ;;  %v299_v23 = vld [vmem:[%s1230_s1 + $0x18] sm:$0xff]  ;;  %v298_v24 = vld [vmem:[%s1230_s1 + $0x10] sm:$0xff] }
  0x19   : > { %389 = vmatpush.msra.mxu1 %v317_v7  ;;  %757 = vmatpush.msra.mxu3 %v317_v7  ;;  %v301_v21 = vld [vmem:[%s1230_s1 + $0x28] sm:$0xff]  ;;  %v287_v25 = vld [vmem:[%s1099_s23 + $0x18] sm:$0xff]  ;;  %v296_v28 = vld [vmem:[%s1230_s1] sm:$0xff] }
  0x1a   : > { %742 = vmatpush.msra.mxu2 %v307_v8  ;;  %348 = vmatpush.msra.mxu0 %v307_v8  ;;  %v295_v26 = vld [vmem:[%s1099_s23 + $0x58] sm:$0xff]  ;;  %v297_v27 = vld [vmem:[%s1230_s1 + $0x8] sm:$0xff]  ;;  %v288_v29 = vld [vmem:[%s1099_s23 + $0x20] sm:$0xff] }
  0x1b   : > { %390 = vmatpush.msra.mxu1 %v316_v9  ;;  %758 = vmatpush.msra.mxu3 %v316_v9  ;;  %v284_v30 = vld [vmem:[%s1099_s23] sm:$0xff]  ;;  %v289_v31 = vld [vmem:[%s1099_s23 + $0x28] sm:$0xff]  ;;  %v290_v32 = vld [vmem:[%s1099_s23 + $0x30] sm:$0xff] }
  0x1c   : > { %743 = vmatpush.msra.mxu2 %v306_v10  ;;  %349 = vmatpush.msra.mxu0 %v306_v10  ;;  %v286_v33 = vld [vmem:[%s1099_s23 + $0x10] sm:$0xff]  ;;  %v291_v34 = vld [vmem:[%s1099_s23 + $0x38] sm:$0xff]  ;;  %v292_v35 = vld [vmem:[%s1099_s23 + $0x40] sm:$0xff] }
  0x1d   : > { %391 = vmatpush.msra.mxu1 %v315_v11  ;;  %759 = vmatpush.msra.mxu3 %v315_v11  ;;  %v294_v36 = vld [vmem:[%s1099_s23 + $0x50] sm:$0xff]  ;;  %v869_v39 = vld [vmem:[%s1231_s2] ss:$0 sm:$0xff]  ;;  %s737_s23 = smul.u32 (%p1032_p3), 48, %s938_s14 }
  0x1e   : > { %744 = vmatpush.msra.mxu2 %v305_v12  ;;  %350 = vmatpush.msra.mxu0 %v305_v12 }
  0x1f   : > { %392 = vmatpush.msra.mxu1 %v314_v13  ;;  %760 = vmatpush.msra.mxu3 %v314_v13  ;;  %s1171_s6 = scalar_lea.vmem (%p1032_p3), %s1232_s3, %s737_s23  }
  0x20   : > { %745 = vmatpush.msra.mxu2 %v304_v14  ;;  %351 = vmatpush.msra.mxu0 %v304_v14 }
  0x21   : > { %393 = vmatpush.msra.mxu1 %v313_v15  ;;  %761 = vmatpush.msra.mxu3 %v313_v15 }
  0x22   : > { %746 = vmatpush.msra.mxu2 %v303_v16  ;;  %352 = vmatpush.msra.mxu0 %v303_v16 }
  0x23   : > { %394 = vmatpush.msra.mxu1 %v312_v17  ;;  %762 = vmatpush.msra.mxu3 %v312_v17 }
  0x24   : > { %747 = vmatpush.msra.mxu2 %v302_v18  ;;  %718 = vmatmul.msk.f32.vlgmr.msra.gmra.mxu1 %vm325_vm0, %v285_v19 }
  0x25   : > { %353 = vmatpush.msra.mxu0 %v302_v18  ;;  %722 = vmatmul.msk.f32.vlgmr.msra.gmra.mxu3 %vm325_vm0, %v293_v20 }
  0x26   : > { %748 = vmatpush.msra.mxu2 %v301_v21 }
  0x27   : > { %354 = vmatpush.msra.mxu0 %v301_v21 }
  0x28   : > { %749 = vmatpush.msra.mxu2 %v300_v22 }
  0x29   : > { %355 = vmatpush.msra.mxu0 %v300_v22 }
  0x2a   : > { %750 = vmatpush.msra.mxu2 %v299_v23 }
  0x2b   : > { %356 = vmatpush.msra.mxu0 %v299_v23 }
  0x2c   : > { %751 = vmatpush.msra.mxu2 %v298_v24  ;;  %719 = vmatmul.msk.f32.gmra.mxu1 %vm325_vm0, %v287_v25 }
  0x2d   : > { %357 = vmatpush.msra.mxu0 %v298_v24  ;;  %723 = vmatmul.msk.f32.gmra.mxu3 %vm325_vm0, %v295_v26 }
  0x2e   : > { %752 = vmatpush.msra.mxu2 %v297_v27 }
  0x2f   : > { %358 = vmatpush.msra.mxu0 %v297_v27 }
  0x30   : > { %753 = vmatpush.msra.mxu2 %v296_v28 }
  0x31   : > { %366 = vmatmul.f32.vlgmr.msra.gmra.mxu2 %v288_v29  ;;  %359 = vmatpush.msra.mxu0 %v296_v28 }
  0x32   : > { %360 = vmatmul.f32.vlgmr.msra.gmra.mxu0 %v284_v30 }
  0x34   : > { %720 = vmatmul.msk.f32.gmra.mxu1 %vm325_vm0, %v289_v31 }
  0x39   : > { %369 = vmatmul.f32.gmra.mxu2 %v290_v32 }
  0x3a   : > { %363 = vmatmul.f32.gmra.mxu0 %v286_v33 }
  0x3c   : > { %721 = vmatmul.msk.f32.gmra.mxu1 %vm325_vm0, %v291_v34 }
  0x41   : > { %372 = vmatmul.f32.gmra.mxu2 %v292_v35 }
  0x49   : > { %375 = vmatmul.f32.gmra.mxu2 %v294_v36 }
  0xa1   : > { %v396_v37 = vpop.f32.mrf.mxu1 }
  0xa8   : > { %v408_v54 = vpop.f32.mrf.mxu3 }
  0xa9   : > { %v399_v38 = vpop.f32.mrf.mxu1 }
  0xaf   : > { %v361_v40 = vpop.f32.mrf.mxu0 }
  0xb0   : > { %v362_v41 = vadd.f32 %v869_v39, %v361_v40  ;;  %v411_v59 = vpop.f32.mrf.mxu3 }
  0xb1   : > { %v402_v43 = vpop.f32.mrf.mxu1 }
  0xb2   : > { %v397_v42 = vadd.f32 %v396_v37, %v362_v41 }
  0xb4   : > { %415 = vst.msk [vmem:[%s1150_s30] sm:$0xff] %vm414_vm1, %v397_v42  ;;  %v367_v44 = vpop.f32.mrf.mxu2 }
  0xb5   : > { %v368_v45 = vadd.f32 %v869_v39, %v367_v44 }
  0xb7   : > { %v403_v46 = vadd.f32 %v402_v43, %v368_v45  ;;  %v364_v47 = vpop.f32.mrf.mxu0 }
  0xb8   : > { %v365_v48 = vadd.f32 %v869_v39, %v364_v47 }
  0xb9   : > { %417 = vst.msk [vmem:[%s1150_s30 + $0x10] sm:$0xff] %vm414_vm1, %v403_v46  ;;  %v405_v51 = vpop.f32.mrf.mxu1 }
  0xba   : > { %v400_v49 = vadd.f32 %v399_v38, %v365_v48 }
  0xbc   : > { %416 = vst.msk [vmem:[%s1150_s30 + $0x8] sm:$0xff] %vm414_vm1, %v400_v49  ;;  %v370_v50 = vpop.f32.mrf.mxu2 }
  0xbd   : > { %v371_v52 = vadd.f32 %v869_v39, %v370_v50 }
  0xbf   : > { %v406_v53 = vadd.f32 %v405_v51, %v371_v52 }
  0xc1   : > { %418 = vst.msk [vmem:[%s1150_s30 + $0x18] sm:$0xff] %vm414_vm1, %v406_v53 }
  0xc4   : > { %v373_v55 = vpop.f32.mrf.mxu2 }
  0xc5   : > { %v374_v56 = vadd.f32 %v869_v39, %v373_v55 }
  0xc7   : > { %v409_v57 = vadd.f32 %v408_v54, %v374_v56 }
  0xc9   : > { %419 = vst.msk [vmem:[%s1150_s30 + $0x20] sm:$0xff] %vm414_vm1, %v409_v57 }
  0xcc   : > { %v376_v58 = vpop.f32.mrf.mxu2 }
  0xcd   : > { %v377_v60 = vadd.f32 %v869_v39, %v376_v58  ;;  %427 = sbr.rel (!%p1032_p3) target bundleno = 264 (0x108), region = 36 }
  0xcf   : > { %v412_v61 = vadd.f32 %v411_v59, %v377_v60 }
  0xd1   : > { %420 = vst.msk [vmem:[%s1150_s30 + $0x28] sm:$0xff] %vm414_vm1, %v412_v61 }
  0xd2   : > { %s1244_s12 = smov (!%p430_p9, %s429_s12), 6 }
  0xd3   : > { %s724_s7 = sshll.u32 %s1244_s12, 3 }
  0xd4   : > { %p727_p10 = scmp.eq.s32.totalorder %s724_s7, 0 }
  0xd5   : > { %870 = sdivrem.u32 (!%p727_p10), %s1244_s12, 6 }
  0xd6   : > { %439 = sbr.rel (%p727_p10) target bundleno = 264 (0x108), region = 40 }
  0xde   : > { %s1177_s20 = spop.drf %870 }
  0xdf   : > { %s872_s8 = spop.drf %870  ;;  %p728_p11 = scmp.le.s32.totalorder %s1177_s20, 0 }
  0xe0   : > { %s1234_s14 = smov (!%p728_p11), %s1171_s6  ;;  %s1235_s27 = smov (!%p728_p11), %s1150_s30 }
  0xe1   : > { %636 = sbr.rel (%p728_p11) target bundleno = 238 (0xee), region = 122  ;;  %s1186_s9 = smov (!%p728_p11), 0  }
  0xe2   : > { %s1188_s10 = smov (!%p728_p11), 0  }
  0xe6 LB: >> { %v514_v62 = vld [vmem:[%s954_s27] sm:$0xff]  ;;  %v516_v63 = vld [vmem:[%s954_s27 + $0x8] sm:$0xff]  ;;  %v518_v0 = vld [vmem:[%s954_s27 + $0x10] sm:$0xff]  ;;  %s526_s11 = sadd.s32 1, %s958_s9  ;;  %s508_s10 = sadd.s32 1, %s962_s10   ;;  %s962_s10 = sphi %s1188_s10, %s508_s10   ;;  %s958_s9 = sphi %s1186_s9, %s1236_s9   ;;  %s954_s27 = sphi %s1235_s27, %s531_s27   ;;  %s950_s14 = sphi %s1234_s14, %s532_s14  }
  0xe7   : >> { %515 = vst [vmem:[%s950_s14] sm:$0xff] %v514_v62  ;;  %v520_v1 = vld [vmem:[%s954_s27 + $0x18] sm:$0xff]  ;;  %p527_p12 = scmp.ge.s32.totalorder %s526_s11, %s1177_s20  ;;  %v522_v2 = vld [vmem:[%s954_s27 + $0x20] sm:$0xff]  ;;  %v524_v3 = vld [vmem:[%s954_s27 + $0x28] sm:$0xff]  ;;  %p507_p13 = scmp.ge.s32.totalorder %s508_s10, %s1177_s20 }
  0xe8   : >> { %517 = vst [vmem:[%s950_s14 + $0x8] sm:$0xff] %v516_v63 }
  0xe9   : >> { %519 = vst [vmem:[%s950_s14 + $0x10] sm:$0xff] %v518_v0  ;;  %s1246_s11 = smov (%p527_p12, %s526_s11), 0  ;;  %510 = sbr.rel (!%p507_p13) target bundleno = 230 (0xe6), region = 128 }
  0xea   : >> { %521 = vst [vmem:[%s950_s14 + $0x18] sm:$0xff] %v520_v1  ;;  %s529_s17 = smul.u32 48, %s1246_s11  ;;  %s1236_s9 = smov %s1246_s11 }
  0xeb   : >> { %523 = vst [vmem:[%s950_s14 + $0x20] sm:$0xff] %v522_v2 }
  0xec   : >> { %525 = vst [vmem:[%s950_s14 + $0x28] sm:$0xff] %v524_v3  ;;  %s531_s27 = scalar_lea.vmem %s1150_s30, %s529_s17 [#allocation2]   ;;  %s532_s14 = scalar_lea.vmem %s1171_s6, %s529_s17  }
  0xee PF: > { %873 = sdivrem.u32 %s1244_s12, 6 }
  0xef   : > { %s729_s19 = smul.u32 48, %s1177_s20 }
  0xf1   : > { %s1209_s21 = scalar_lea.vmem %s1150_s30, %s729_s19 [#allocation2]   ;;  %s539_s24 = scalar_lea.vmem %s1171_s6, %s729_s19  }
  0xf7   : > { %s874_s25 = spop.drf %873 }
  0xf8   : > { %s875_s26 = spop.drf %873 }
  0xf9   : > { %p731_p0 = scmp.le.s32.totalorder %s875_s26, 0 }
  0xfa   : > { %s964_s28 = smov (!%p731_p0), %s539_s24   ;;  %s968_s29 = smov (!%p731_p0), %s1209_s21  }
  0xfb   : > { %650 = sbr.rel (%p731_p0) target bundleno = 264 (0x108), region = 133  ;;  %s972_s23 = smov (!%p731_p0), 0  }
  0xfc   : > { %s976_s4 = smov (!%p731_p0), 0  }
 0x100 LB: >> { %v549_v4 = vld [vmem:[%s970_s29] sm:$0xff]  ;;  %s551_s30 = sadd.s32 1, %s974_s23  ;;  %s543_s4 = sadd.s32 1, %s978_s4   ;;  %s978_s4 = sphi %s976_s4, %s543_s4   ;;  %s974_s23 = sphi %s972_s23, %s973_s23   ;;  %s970_s29 = sphi %s968_s29, %s556_s29   ;;  %s966_s28 = sphi %s964_s28, %s557_s28  }
 0x101   : >> { %550 = vst [vmem:[%s966_s28] sm:$0xff] %v549_v4  ;;  %p552_p1 = scmp.ge.s32.totalorder %s551_s30, %s875_s26  ;;  %p542_p2 = scmp.ge.s32.totalorder %s543_s4, %s875_s26 }
 0x103   : >> { %s1248_s30 = smov (%p552_p1, %s551_s30), 0  ;;  %545 = sbr.rel (!%p542_p2) target bundleno = 256 (0x100), region = 139 }
 0x104   : >> { %s732_s12 = sshll.u32 %s1248_s30, 3  ;;  %s973_s23 = smov %s1248_s30  }
 0x105   : >> { %s556_s29 = scalar_lea.vmem %s1209_s21, %s732_s12 [#allocation2]   ;;  %s557_s28 = scalar_lea.vmem %s539_s24, %s732_s12  }
 0x108 PF: > { %s13_s16 = sadd.s32 1, %s946_s16   ;;  %s1237_s12 = smov %s934_s13 }
 0x109   : > { %p10_p3 = scmp.ge.s32.totalorder %s13_s16, 5   ;;  %s1238_s13 = smov %s1041_s22 }
 0x10a   : > { %s1239_s14 = smov %s942_s15  ;;  %s1240_s15 = smov %s1242_s18 }
 0x10b   :  { %12 = sbr.rel (!%p10_p3) target bundleno = 3 (0x3), region = 150 }

</bundles_post_ra>
